<compile_context>
chip_gen: v7x
topology: tpu7x:2x2x1
jax: 0.10.0
libtpu: 0.0.40
codegen_flags: <defaults>
</compile_context>

<pallas_src>
import jax
import jax.numpy as jnp
from jax import lax
from jax.experimental import pallas as pl
from jax.experimental.pallas import tpu as pltpu

_VMEM_LIMIT = 64 * 1024 * 1024  # raise scoped VMEM above 16/32 MiB defaults


def _pick_tile(n, max_tile=512, quantum=128):
    """Largest tile <= max_tile that is a multiple of `quantum` and divides n;
    otherwise fall back to the full extent (always a legal block)."""
    if n <= max_tile:
        return n
    t = (max_tile // quantum) * quantum
    while t >= quantum:
        if n % t == 0:
            return t
        t -= quantum
    return n


# ----------------------------------------------------------------------------
# Pallas kernels
# ----------------------------------------------------------------------------
def _fused_feature_kernel(x_ref, wcom_ref, bcom_ref, wseg_ref, bseg_ref,
                          wcls_ref, bcls_ref, wmat_ref, bmat_ref,
                          cls_ref, mat_ref):
    """Fused Common -> {Seg -> Cls, Mat(+L2)} chain on a (4*Cin, TM) pixel tile.

    Channels-first orientation: every matmul is (Cout, Cin) @ (Cin, TM) and
    every store is (Cout, TM) — lane-dense along the pixel axis."""
    x = x_ref[0]                                                    # (4*Cin, TM) f32

    com = jnp.dot(wcom_ref[...], x, preferred_element_type=jnp.float32) + bcom_ref[...]
    com = jnp.maximum(com, 0.0)                                     # (c_com, TM)

    seg = jnp.dot(wseg_ref[...], com, preferred_element_type=jnp.float32) + bseg_ref[...]
    seg = jnp.maximum(seg, 0.0)                                     # (c_feat, TM)

    cls = jnp.dot(wcls_ref[...], seg, preferred_element_type=jnp.float32) + bcls_ref[...]
    cls_ref[0] = cls                                                # (num_classes, TM)

    mat = jnp.dot(wmat_ref[...], com, preferred_element_type=jnp.float32) + bmat_ref[...]
    mat = jnp.maximum(mat, 0.0)
    # F.normalize(p=2, dim=channel): rsqrt runs on the EUP slot.
    inv_norm = lax.rsqrt(jnp.sum(mat * mat, axis=0, keepdims=True) + 1e-12)
    mat_ref[0] = (mat * inv_norm).astype(mat_ref.dtype)             # bf16, lane-dense


def fused_features(x_cf, params):
    """x_cf: (B, 4*Cin, HW) channels-first space-to-depth input.
    Returns (cls, mat): (B, num_classes, HW) f32 and (B, c_feat, HW) bf16."""
    B, cin4, HW = x_cf.shape
    c_com = params["w_com_eff"].shape[0]
    c_feat = params["w_mat"].shape[0]
    num_classes = params["w_cls"].shape[0]
    TM = _pick_tile(HW)
    grid = (B, pl.cdiv(HW, TM))

    def wspec(shape):
        return pl.BlockSpec(shape, lambda b, i: (0, 0))

    return pl.pallas_call(
        _fused_feature_kernel,
        out_shape=(jax.ShapeDtypeStruct((B, num_classes, HW), jnp.float32),
                   jax.ShapeDtypeStruct((B, c_feat, HW), jnp.bfloat16)),
        grid=grid,
        in_specs=[
            pl.BlockSpec((1, cin4, TM), lambda b, i: (b, 0, i)),
            wspec((c_com, cin4)), wspec((c_com, 1)),
            wspec((c_feat, c_com)), wspec((c_feat, 1)),
            wspec((num_classes, c_feat)), wspec((num_classes, 1)),
            wspec((c_feat, c_com)), wspec((c_feat, 1)),
        ],
        out_specs=(
            pl.BlockSpec((1, num_classes, TM), lambda b, i: (b, 0, i)),
            pl.BlockSpec((1, c_feat, TM), lambda b, i: (b, 0, i)),
        ),
        compiler_params=pltpu.CompilerParams(
            dimension_semantics=("parallel", "parallel"),
            vmem_limit_bytes=_VMEM_LIMIT),
    )(x_cf, params["w_com_eff"], params["b_com"],
      params["w_seg"], params["b_seg"],
      params["w_cls"], params["b_cls"],
      params["w_mat"], params["b_mat"])


def _corr_kernel(src_ref, tar_ref, o_ref):
    # corr[p_src, p_tar] = <feat_src[:, p_src], feat_tar[:, p_tar]>
    # Contract the channel axes directly — no in-kernel transpose.
    o_ref[0] = lax.dot_general(
        src_ref[0], tar_ref[0], (((0,), (0,)), ((), ())),
        preferred_element_type=jnp.float32)


def feature_correlation(src_f, tar_f):
    """src_f, tar_f: (B, C, HW) bf16 (channels-first, L2-normed)
       -> (B, HW_src, HW_tar) f32.
    Matches FeatureCorrelation(feature_A=src, feature_B=tar): dim 1 indexes
    source positions, dim 2 target positions.  Tiled over target positions."""
    B, C, S = src_f.shape
    T = tar_f.shape[2]
    TN = _pick_tile(T)
    grid = (B, pl.cdiv(T, TN))
    return pl.pallas_call(
        _corr_kernel,
        out_shape=jax.ShapeDtypeStruct((B, S, T), jnp.float32),
        grid=grid,
        in_specs=[
            pl.BlockSpec((1, C, S), lambda b, j: (b, 0, 0)),
            pl.BlockSpec((1, C, TN), lambda b, j: (b, 0, j)),
        ],
        out_specs=pl.BlockSpec((1, S, TN), lambda b, j: (b, 0, j)),
        compiler_params=pltpu.CompilerParams(
            dimension_semantics=("parallel", "parallel"),
            vmem_limit_bytes=_VMEM_LIMIT),
    )(src_f, tar_f)


# ----------------------------------------------------------------------------
# JAX glue (data-dependent / reshaping parts)
# ----------------------------------------------------------------------------
def knn_geometric(corr, lbl_hw, K):
    """corr: (B, HW_src, HW_tar) f32; lbl_hw: (B, C, h, w) -> (B, C, h, w).
    pred[b,c,t] = sum_k corr[b, idx_k(t), t] * lbl[b, c, idx_k(t)] over the
    top-K source positions per target — O(C*K*T) gather form (no one_hot,
    no dense masked matmul).
    TODO(synk): the gather/weighted-sum could also be a Pallas kernel with
    scalar-prefetched indices; the top-K selection itself is data-dependent
    and stays in JAX."""
    B, S, T = corr.shape
    C, h, w = lbl_hw.shape[1], lbl_hw.shape[2], lbl_hw.shape[3]
    lbl_flat = lbl_hw.reshape(B, C, S)

    def one_batch(lbl_b, corr_b):          # lbl_b (C, S), corr_b (S, T)
        vals, idx = lax.top_k(corr_b.T, K)  # (T, K) values / source indices
        g = lbl_b[:, idx]                   # (C, T, K) gathered labels
        return jnp.einsum("ctk,tk->ct", g, vals)

    pred = jax.vmap(one_batch)(lbl_flat, corr)   # (B, C, T)
    return pred.reshape(B, C, h, w)


def space_to_depth_cf(img):
    """(B, Cin, H, W) -> (B, 4*Cin, h*w) channels-first, 2x2 neighbours stacked.
    TODO(synk): could be folded into the Pallas feature kernel via strided
    loads to save one full-image HBM pass at large resolutions."""
    B, C, H, W = img.shape
    h, w = H // 2, W // 2
    x = img.reshape(B, C, h, 2, w, 2)
    x = jnp.transpose(x, (0, 1, 3, 5, 2, 4))   # (B, C, 2, 2, h, w)
    return x.reshape(B, 4 * C, h * w)


def nearest_resize_nchw(x, out_h, out_w):
    """PyTorch F.interpolate default (mode='nearest') index convention."""
    B, C, H, W = x.shape
    ri = jnp.floor(jnp.arange(out_h) * (H / out_h)).astype(jnp.int32)
    ci = jnp.floor(jnp.arange(out_w) * (W / out_w)).astype(jnp.int32)
    return x[:, :, ri][:, :, :, ci]


def bilinear_resize_nchw(x, out_h, out_w):
    B, C, _, _ = x.shape
    return jax.image.resize(x, (B, C, out_h, out_w), method="bilinear")


def init_params(key, num_classes=5, c_in=3, c_com=16, c_feat=32):
    k = jax.random.split(key, 8)
    s = 0.1
    w_com = jax.random.normal(k[0], (c_com, c_in), jnp.float32) * s
    return {
        # fused 2x2 avg-pool + 1x1 conv (channels-first): input channel
        # (c*4 + n) is original channel c, pooled neighbour n.
        "w_com_eff": jnp.repeat(w_com, 4, axis=1) / 4.0,                 # (c_com, 4*c_in)
        "b_com": jax.random.normal(k[1], (c_com, 1), jnp.float32) * s,
        "w_seg": jax.random.normal(k[2], (c_feat, c_com), jnp.float32) * s,
        "b_seg": jax.random.normal(k[3], (c_feat, 1), jnp.float32) * s,
        "w_cls": jax.random.normal(k[4], (num_classes, c_feat), jnp.float32) * s,
        "b_cls": jax.random.normal(k[5], (num_classes, 1), jnp.float32) * s,
        "w_mat": jax.random.normal(k[6], (c_feat, c_com), jnp.float32) * s,
        "b_mat": jax.random.normal(k[7], (c_feat, 1), jnp.float32) * s,
    }


def semi_spnet_forward(params, src_img, tar_img, src_lbl, tar_lbl, tr_type, K=4):
    B, Cin, Hin, Win = src_img.shape
    h, w = Hin // 2, Win // 2
    num_classes = params["w_cls"].shape[0]

    src_x = space_to_depth_cf(src_img)
    tar_x = space_to_depth_cf(tar_img)

    # One fused pallas_call per image: seg logits (f32) + L2-normed matching
    # features (bf16), both channels-first and lane-dense along pixels.
    src_seg_flat, src_pro = fused_features(src_x, params)
    tar_seg_flat, tar_pro = fused_features(tar_x, params)

    src_seg_lbl = src_seg_flat.reshape(B, num_classes, h, w)
    tar_seg_lbl = tar_seg_flat.reshape(B, num_classes, h, w)

    src_tar_corr = feature_correlation(src_pro, tar_pro)   # (B, HW_src, HW_tar)
    tar_src_corr = feature_correlation(tar_pro, src_pro)

    if tr_type == 2:
        tar_img_pro_lbl = knn_geometric(src_tar_corr,
                                        nearest_resize_nchw(src_lbl, h, w), K)
    else:
        tar_img_pro_lbl = knn_geometric(src_tar_corr, src_seg_lbl, K)

    if tr_type != 0:
        src_img_pro_lbl = knn_geometric(tar_src_corr,
                                        nearest_resize_nchw(tar_lbl, h, w), K)
    else:
        src_img_pro_lbl = knn_geometric(tar_src_corr, tar_seg_lbl, K)

    return (
        bilinear_resize_nchw(src_seg_lbl, Hin, Win),
        bilinear_resize_nchw(tar_seg_lbl, Hin, Win),
        bilinear_resize_nchw(src_img_pro_lbl, Hin, Win),
        bilinear_resize_nchw(tar_img_pro_lbl, Hin, Win),
    )


# ----------------------------------------------------------------------------
if __name__ == "__main__":
    B, Cin, Hin, Win = 2, 3, 16, 16
    num_classes, K = 5, 4

    key = jax.random.PRNGKey(0)
    k_src, k_tar, k_slbl, k_tlbl, k_par = jax.random.split(key, 5)

    src_img = jax.random.normal(k_src, (B, Cin, Hin, Win), jnp.float32)
    tar_img = jax.random.normal(k_tar, (B, Cin, Hin, Win), jnp.float32)
    src_lbl = jax.random.uniform(k_slbl, (B, num_classes, Hin, Win), jnp.float32)
    tar_lbl = jax.random.uniform(k_tlbl, (B, num_classes, Hin, Win), jnp.float32)

    params = init_params(k_par, num_classes=num_classes, c_in=Cin)

    fwd = jax.jit(semi_spnet_forward, static_argnames=("tr_type", "K"))
    outs = fwd(params, src_img, tar_img, src_lbl, tar_lbl, tr_type=2, K=K)
    outs = jax.block_until_ready(outs)

    expected = (B, num_classes, Hin, Win)
    assert all(o.shape == expected for o in outs), [o.shape for o in outs]
    assert all(bool(jnp.all(jnp.isfinite(o))) for o in outs)
    print("KERNEL_OK")
</pallas_src>

<mosaic_0001>
module attributes {stable_mosaic.version = 11 : i64} {
  func.func @_fused_feature_kernel(%arg0: i32, %arg1: i32, %arg2: memref<1x12x64xf32, #tpu.memory_space<vmem>>, %arg3: memref<16x12xf32, #tpu.memory_space<vmem>>, %arg4: memref<16x1xf32, #tpu.memory_space<vmem>>, %arg5: memref<32x16xf32, #tpu.memory_space<vmem>>, %arg6: memref<32x1xf32, #tpu.memory_space<vmem>>, %arg7: memref<5x32xf32, #tpu.memory_space<vmem>>, %arg8: memref<5x1xf32, #tpu.memory_space<vmem>>, %arg9: memref<32x16xf32, #tpu.memory_space<vmem>>, %arg10: memref<32x1xf32, #tpu.memory_space<vmem>>, %arg11: memref<1x5x64xf32, #tpu.memory_space<vmem>>, %arg12: memref<1x32x64xbf16, #tpu.memory_space<vmem>>) attributes {dimension_semantics = [#tpu.dimension_semantics<parallel>, #tpu.dimension_semantics<parallel>], iteration_bounds = array<i64: 2, 1>, scalar_prefetch = 0 : i64, scratch_operands = 0 : i64, tpu.core_type = #tpu.core_type<tc>, window_params = [{transform_indices = @transform_0, window_bounds = array<i64: 1, 12, 64>}, {pipeline_mode = #tpu.pipeline_mode<synchronous>, transform_indices = @transform_1, window_bounds = array<i64: 16, 12>}, {pipeline_mode = #tpu.pipeline_mode<synchronous>, transform_indices = @transform_2, window_bounds = array<i64: 16, 1>}, {pipeline_mode = #tpu.pipeline_mode<synchronous>, transform_indices = @transform_3, window_bounds = array<i64: 32, 16>}, {pipeline_mode = #tpu.pipeline_mode<synchronous>, transform_indices = @transform_4, window_bounds = array<i64: 32, 1>}, {pipeline_mode = #tpu.pipeline_mode<synchronous>, transform_indices = @transform_5, window_bounds = array<i64: 5, 32>}, {pipeline_mode = #tpu.pipeline_mode<synchronous>, transform_indices = @transform_6, window_bounds = array<i64: 5, 1>}, {pipeline_mode = #tpu.pipeline_mode<synchronous>, transform_indices = @transform_7, window_bounds = array<i64: 32, 16>}, {pipeline_mode = #tpu.pipeline_mode<synchronous>, transform_indices = @transform_8, window_bounds = array<i64: 32, 1>}, {transform_indices = @transform_9, window_bounds = array<i64: 1, 5, 64>}, {transform_indices = @transform_10, window_bounds = array<i64: 1, 32, 64>}]} {
    %c0 = arith.constant 0 : index
    %c0_0 = arith.constant 0 : index
    %c0_1 = arith.constant 0 : index
    %0 = vector.load %arg2[%c0, %c0_0, %c0_1] : memref<1x12x64xf32, #tpu.memory_space<vmem>>, vector<1x12x64xf32>
    %1 = vector.shape_cast %0 : vector<1x12x64xf32> to vector<12x64xf32>
    %c0_2 = arith.constant 0 : index
    %c0_3 = arith.constant 0 : index
    %2 = vector.load %arg3[%c0_2, %c0_3] : memref<16x12xf32, #tpu.memory_space<vmem>>, vector<16x12xf32>
    %cst = arith.constant dense<0.000000e+00> : vector<16x64xf32>
    %3 = tpu.matmul %2, %1, %cst {dimension_numbers = #tpu.dot_dimension_numbers<[1], [0], [0], [1], [0, 0, 1, 1], [], []>} : vector<16x12xf32>, vector<12x64xf32>, vector<16x64xf32> -> vector<16x64xf32>
    %c0_4 = arith.constant 0 : index
    %c0_5 = arith.constant 0 : index
    %4 = vector.load %arg4[%c0_4, %c0_5] : memref<16x1xf32, #tpu.memory_space<vmem>>, vector<16x1xf32>
    %5 = vector.broadcast %4 : vector<16x1xf32> to vector<16x64xf32>
    %6 = arith.addf %3, %5 : vector<16x64xf32>
    %cst_6 = arith.constant 0.000000e+00 : f32
    %7 = vector.broadcast %cst_6 : f32 to vector<16x64xf32>
    %8 = arith.maximumf %6, %7 : vector<16x64xf32>
    %c0_7 = arith.constant 0 : index
    %c0_8 = arith.constant 0 : index
    %9 = vector.load %arg5[%c0_7, %c0_8] : memref<32x16xf32, #tpu.memory_space<vmem>>, vector<32x16xf32>
    %cst_9 = arith.constant dense<0.000000e+00> : vector<32x64xf32>
    %10 = tpu.matmul %9, %8, %cst_9 {dimension_numbers = #tpu.dot_dimension_numbers<[1], [0], [0], [1], [0, 0, 1, 1], [], []>} : vector<32x16xf32>, vector<16x64xf32>, vector<32x64xf32> -> vector<32x64xf32>
    %c0_10 = arith.constant 0 : index
    %c0_11 = arith.constant 0 : index
    %11 = vector.load %arg6[%c0_10, %c0_11] : memref<32x1xf32, #tpu.memory_space<vmem>>, vector<32x1xf32>
    %12 = vector.broadcast %11 : vector<32x1xf32> to vector<32x64xf32>
    %13 = arith.addf %10, %12 : vector<32x64xf32>
    %cst_12 = arith.constant 0.000000e+00 : f32
    %14 = vector.broadcast %cst_12 : f32 to vector<32x64xf32>
    %15 = arith.maximumf %13, %14 : vector<32x64xf32>
    %c0_13 = arith.constant 0 : index
    %c0_14 = arith.constant 0 : index
    %16 = vector.load %arg7[%c0_13, %c0_14] : memref<5x32xf32, #tpu.memory_space<vmem>>, vector<5x32xf32>
    %cst_15 = arith.constant dense<0.000000e+00> : vector<5x64xf32>
    %17 = tpu.matmul %16, %15, %cst_15 {dimension_numbers = #tpu.dot_dimension_numbers<[1], [0], [0], [1], [0, 0, 1, 1], [], []>} : vector<5x32xf32>, vector<32x64xf32>, vector<5x64xf32> -> vector<5x64xf32>
    %c0_16 = arith.constant 0 : index
    %c0_17 = arith.constant 0 : index
    %18 = vector.load %arg8[%c0_16, %c0_17] : memref<5x1xf32, #tpu.memory_space<vmem>>, vector<5x1xf32>
    %19 = vector.broadcast %18 : vector<5x1xf32> to vector<5x64xf32>
    %20 = arith.addf %17, %19 : vector<5x64xf32>
    %c0_18 = arith.constant 0 : index
    %c0_19 = arith.constant 0 : index
    %c0_20 = arith.constant 0 : index
    %21 = vector.load %arg11[%c0_18, %c0_19, %c0_20] : memref<1x5x64xf32, #tpu.memory_space<vmem>>, vector<1x5x64xf32>
    %22 = vector.shape_cast %21 : vector<1x5x64xf32> to vector<5x64xf32>
    %23 = vector.shape_cast %20 : vector<5x64xf32> to vector<1x5x64xf32>
    tpu.vector_store %arg11[%c0_18, %c0_19, %c0_20], %23 {strides = array<i32>} : memref<1x5x64xf32, #tpu.memory_space<vmem>>, vector<1x5x64xf32>,
    %c0_21 = arith.constant 0 : index
    %c0_22 = arith.constant 0 : index
    %24 = vector.load %arg9[%c0_21, %c0_22] : memref<32x16xf32, #tpu.memory_space<vmem>>, vector<32x16xf32>
    %cst_23 = arith.constant dense<0.000000e+00> : vector<32x64xf32>
    %25 = tpu.matmul %24, %8, %cst_23 {dimension_numbers = #tpu.dot_dimension_numbers<[1], [0], [0], [1], [0, 0, 1, 1], [], []>} : vector<32x16xf32>, vector<16x64xf32>, vector<32x64xf32> -> vector<32x64xf32>
    %c0_24 = arith.constant 0 : index
    %c0_25 = arith.constant 0 : index
    %26 = vector.load %arg10[%c0_24, %c0_25] : memref<32x1xf32, #tpu.memory_space<vmem>>, vector<32x1xf32>
    %27 = vector.broadcast %26 : vector<32x1xf32> to vector<32x64xf32>
    %28 = arith.addf %25, %27 : vector<32x64xf32>
    %cst_26 = arith.constant 0.000000e+00 : f32
    %29 = vector.broadcast %cst_26 : f32 to vector<32x64xf32>
    %30 = arith.maximumf %28, %29 : vector<32x64xf32>
    %31 = arith.mulf %30, %30 : vector<32x64xf32>
    %cst_27 = arith.constant dense<0.000000e+00> : vector<64xf32>
    %32 = vector.multi_reduction <add>, %31, %cst_27 [0] : vector<32x64xf32> to vector<64xf32>
    %33 = vector.shape_cast %32 : vector<64xf32> to vector<1x64xf32>
    %cst_28 = arith.constant 9.99999996E-13 : f32
    %34 = vector.broadcast %cst_28 : f32 to vector<1x64xf32>
    %35 = arith.addf %33, %34 : vector<1x64xf32>
    %36 = math.rsqrt %35 : vector<1x64xf32>
    %37 = vector.broadcast %36 : vector<1x64xf32> to vector<32x64xf32>
    %38 = arith.mulf %30, %37 : vector<32x64xf32>
    %39 = arith.truncf %38 : vector<32x64xf32> to vector<32x64xbf16>
    %c0_29 = arith.constant 0 : index
    %c0_30 = arith.constant 0 : index
    %c0_31 = arith.constant 0 : index
    %40 = vector.load %arg12[%c0_29, %c0_30, %c0_31] : memref<1x32x64xbf16, #tpu.memory_space<vmem>>, vector<1x32x64xbf16>
    %41 = vector.shape_cast %40 : vector<1x32x64xbf16> to vector<32x64xbf16>
    %42 = vector.shape_cast %39 : vector<32x64xbf16> to vector<1x32x64xbf16>
    tpu.vector_store %arg12[%c0_29, %c0_30, %c0_31], %42 {strides = array<i32>} : memref<1x32x64xbf16, #tpu.memory_space<vmem>>, vector<1x32x64xbf16>,
    return
  }
  func.func @transform_0(%arg0: i32, %arg1: i32) -> (i32, i32, i32) {
    %c0_i32 = arith.constant 0 : i32
    %c0_i32_0 = arith.constant 0 : i32
    return %arg0, %c0_i32, %arg1 : i32, i32, i32
  }
  func.func @transform_1(%arg0: i32, %arg1: i32) -> (i32, i32) {
    %c0_i32 = arith.constant 0 : i32
    %c0_i32_0 = arith.constant 0 : i32
    %c0_i32_1 = arith.constant 0 : i32
    return %c0_i32, %c0_i32_0 : i32, i32
  }
  func.func @transform_2(%arg0: i32, %arg1: i32) -> (i32, i32) {
    %c0_i32 = arith.constant 0 : i32
    %c0_i32_0 = arith.constant 0 : i32
    %c0_i32_1 = arith.constant 0 : i32
    return %c0_i32, %c0_i32_0 : i32, i32
  }
  func.func @transform_3(%arg0: i32, %arg1: i32) -> (i32, i32) {
    %c0_i32 = arith.constant 0 : i32
    %c0_i32_0 = arith.constant 0 : i32
    %c0_i32_1 = arith.constant 0 : i32
    return %c0_i32, %c0_i32_0 : i32, i32
  }
  func.func @transform_4(%arg0: i32, %arg1: i32) -> (i32, i32) {
    %c0_i32 = arith.constant 0 : i32
    %c0_i32_0 = arith.constant 0 : i32
    %c0_i32_1 = arith.constant 0 : i32
    return %c0_i32, %c0_i32_0 : i32, i32
  }
  func.func @transform_5(%arg0: i32, %arg1: i32) -> (i32, i32) {
    %c0_i32 = arith.constant 0 : i32
    %c0_i32_0 = arith.constant 0 : i32
    %c0_i32_1 = arith.constant 0 : i32
    return %c0_i32, %c0_i32_0 : i32, i32
  }
  func.func @transform_6(%arg0: i32, %arg1: i32) -> (i32, i32) {
    %c0_i32 = arith.constant 0 : i32
    %c0_i32_0 = arith.constant 0 : i32
    %c0_i32_1 = arith.constant 0 : i32
    return %c0_i32, %c0_i32_0 : i32, i32
  }
  func.func @transform_7(%arg0: i32, %arg1: i32) -> (i32, i32) {
    %c0_i32 = arith.constant 0 : i32
    %c0_i32_0 = arith.constant 0 : i32
    %c0_i32_1 = arith.constant 0 : i32
    return %c0_i32, %c0_i32_0 : i32, i32
  }
  func.func @transform_8(%arg0: i32, %arg1: i32) -> (i32, i32) {
    %c0_i32 = arith.constant 0 : i32
    %c0_i32_0 = arith.constant 0 : i32
    %c0_i32_1 = arith.constant 0 : i32
    return %c0_i32, %c0_i32_0 : i32, i32
  }
  func.func @transform_9(%arg0: i32, %arg1: i32) -> (i32, i32, i32) {
    %c0_i32 = arith.constant 0 : i32
    %c0_i32_0 = arith.constant 0 : i32
    return %arg0, %c0_i32, %arg1 : i32, i32, i32
  }
  func.func @transform_10(%arg0: i32, %arg1: i32) -> (i32, i32, i32) {
    %c0_i32 = arith.constant 0 : i32
    %c0_i32_0 = arith.constant 0 : i32
    return %arg0, %c0_i32, %arg1 : i32, i32, i32
  }
}

module attributes {stable_mosaic.version = 11 : i64} {
  func.func @_corr_kernel(%arg0: i32, %arg1: i32, %arg2: memref<1x32x64xbf16, #tpu.memory_space<vmem>>, %arg3: memref<1x32x64xbf16, #tpu.memory_space<vmem>>, %arg4: memref<1x64x64xf32, #tpu.memory_space<vmem>>) attributes {dimension_semantics = [#tpu.dimension_semantics<parallel>, #tpu.dimension_semantics<parallel>], iteration_bounds = array<i64: 2, 1>, scalar_prefetch = 0 : i64, scratch_operands = 0 : i64, tpu.core_type = #tpu.core_type<tc>, window_params = [{transform_indices = @transform_0, window_bounds = array<i64: 1, 32, 64>}, {transform_indices = @transform_1, window_bounds = array<i64: 1, 32, 64>}, {transform_indices = @transform_2, window_bounds = array<i64: 1, 64, 64>}]} {
    %c0 = arith.constant 0 : index
    %c0_0 = arith.constant 0 : index
    %c0_1 = arith.constant 0 : index
    %0 = vector.load %arg2[%c0, %c0_0, %c0_1] : memref<1x32x64xbf16, #tpu.memory_space<vmem>>, vector<1x32x64xbf16>
    %1 = vector.shape_cast %0 : vector<1x32x64xbf16> to vector<32x64xbf16>
    %c0_2 = arith.constant 0 : index
    %c0_3 = arith.constant 0 : index
    %c0_4 = arith.constant 0 : index
    %2 = vector.load %arg3[%c0_2, %c0_3, %c0_4] : memref<1x32x64xbf16, #tpu.memory_space<vmem>>, vector<1x32x64xbf16>
    %3 = vector.shape_cast %2 : vector<1x32x64xbf16> to vector<32x64xbf16>
    %cst = arith.constant dense<0.000000e+00> : vector<64x64xf32>
    %4 = tpu.matmul %1, %3, %cst {dimension_numbers = #tpu.dot_dimension_numbers<[0], [0], [1], [1], [0, 1, 1, 1], [], []>} : vector<32x64xbf16>, vector<32x64xbf16>, vector<64x64xf32> -> vector<64x64xf32>
    %c0_5 = arith.constant 0 : index
    %c0_6 = arith.constant 0 : index
    %c0_7 = arith.constant 0 : index
    %5 = vector.load %arg4[%c0_5, %c0_6, %c0_7] : memref<1x64x64xf32, #tpu.memory_space<vmem>>, vector<1x64x64xf32>
    %6 = vector.shape_cast %5 : vector<1x64x64xf32> to vector<64x64xf32>
    %7 = vector.shape_cast %4 : vector<64x64xf32> to vector<1x64x64xf32>
    tpu.vector_store %arg4[%c0_5, %c0_6, %c0_7], %7 {strides = array<i32>} : memref<1x64x64xf32, #tpu.memory_space<vmem>>, vector<1x64x64xf32>,
    return
  }
  func.func @transform_0(%arg0: i32, %arg1: i32) -> (i32, i32, i32) {
    %c0_i32 = arith.constant 0 : i32
    %c0_i32_0 = arith.constant 0 : i32
    %c0_i32_1 = arith.constant 0 : i32
    return %arg0, %c0_i32, %c0_i32_0 : i32, i32, i32
  }
  func.func @transform_1(%arg0: i32, %arg1: i32) -> (i32, i32, i32) {
    %c0_i32 = arith.constant 0 : i32
    %c0_i32_0 = arith.constant 0 : i32
    return %arg0, %c0_i32, %arg1 : i32, i32, i32
  }
  func.func @transform_2(%arg0: i32, %arg1: i32) -> (i32, i32, i32) {
    %c0_i32 = arith.constant 0 : i32
    %c0_i32_0 = arith.constant 0 : i32
    return %arg0, %c0_i32, %arg1 : i32, i32, i32
  }
}

</mosaic_0001>

<bundles_post_ra>
// kernel: semi_spnet_forward.4
= control target key start
LH: loop header
LB: loop body
LE: loop exit
PB: predicated region body
PF: predicated region fallthrough
CT: control target
= control target key end

     0   :  { %s2444_s0 = inlined_call_operand.hbm [shape: f32[2,12,64], index: 0, kind: input, shape index: {}]   ;;  %s2445_s1 = inlined_call_operand.hbm [shape: f32[16,12], index: 1, kind: input, shape index: {}]   ;;  %s2446_s2 = inlined_call_operand.hbm [shape: f32[16,1], index: 2, kind: input, shape index: {}]   ;;  %s2447_s3 = inlined_call_operand.hbm [shape: f32[32,16], index: 3, kind: input, shape index: {}]   ;;  %s2448_s4 = inlined_call_operand.hbm [shape: f32[32,1], index: 4, kind: input, shape index: {}]   ;;  %s2449_s5 = inlined_call_operand.hbm [shape: f32[5,32], index: 5, kind: input, shape index: {}]   ;;  %s2450_s6 = inlined_call_operand.hbm [shape: f32[5,1], index: 6, kind: input, shape index: {}]   ;;  %s2451_s7 = inlined_call_operand.hbm [shape: f32[32,16], index: 7, kind: input, shape index: {}]   ;;  %s2452_s8 = inlined_call_operand.hbm [shape: f32[32,1], index: 8, kind: input, shape index: {}]   ;;  %s2453_s9 = inlined_call_operand.hbm [shape: f32[2,5,64], index: 9, kind: output, shape index: {0}]   ;;  %s2454_s10 = inlined_call_operand.hbm [shape: bf16[2,32,64], index: 10, kind: output, shape index: {1}]  }
   0x1   :  { %2468 = sst [smem:[#allocation29_spill]] %s2444_s0 }
   0x2   :  { %2469 = sst [smem:[#allocation30_spill]] %s2445_s1 }
   0x3   :  { %2470 = sst [smem:[#allocation31_spill]] %s2453_s9 }
   0x4   :  { %2471 = sst [smem:[#allocation32_spill]] %s2454_s10 }
   0x5   :  { %16 = vsyncpa [#allocation3], 0 }
   0x6   :  { %18 = vsyncpa [#allocation3 + $0x1], 0 }
   0x7   :  { %19 = vsyncpa [#allocation6], 0 }
   0x8   :  { %20 = vsyncpa [#allocation9], 0 }
   0x9   :  { %21 = vsyncpa [#allocation12], 0 }
   0xa   :  { %22 = vsyncpa [#allocation15], 0 }
   0xb   :  { %23 = vsyncpa [#allocation4], 0 }
   0xc   :  { %25 = vsyncpa [#allocation4 + $0x1], 0 }
   0xd   :  { %26 = vsyncpa [#allocation19], 0 }
   0xe   :  { %28 = vsyncpa [#allocation19 + $0x1], 0  ;;  %s1996_s13 = smov 0   ;;  %s1998_s14 = smov 0  }
   0xf   :  { %s2000_s15 = smov 0   ;;  %s2002_s16 = smov 0  }
  0x10   :  { %s2004_s17 = smov 0   ;;  %s2006_s18 = smov 0  }
  0x11 LB: > { %2472 = sst [smem:[#allocation27_spill]] %s1911_s16  ;;  %s2455_s19 = sadd.s32 4294967295, %s1919_s18   ;;  %s1919_s18 = sphi %s2006_s18, %s34_s18   ;;  %s1915_s17 = sphi %s2004_s17, %s2502_s17   ;;  %s1911_s16 = sphi %s2002_s16, %s2501_s16   ;;  %s1907_s15 = sphi %s2000_s15, %s2500_s15   ;;  %s1903_s14 = sphi %s1998_s14, %s2499_s14   ;;  %s1899_s13 = sphi %s1996_s13, %s2498_s13  }
  0x12   : > { %p1241_p0 = scmp.ge.s32.totalorder %s1919_s18, 1  ;;  %p2030_p1 = scmp.eq.s32.totalorder %s2455_s19, 0 }
  0x13   : > { %p303_p2 = scmp.lt.s32.totalorder %s1919_s18, 3  ;;  %s1921_s22 = smov [#allocation5]  }
  0x14   : > { %s2473_s20 = scalar_select %p2030_p1, 1, 0 }
  0x15   : > { %p2035_p3 = pnand %p1241_p0, %p303_p2  ;;  %s315_s23 = sshll.u32 %s1921_s22, 4  ;;  %s2039_s23 = int_to_ptr.vmem [resolvable:$true] %s315_s23 }
  0x16   : > { %s1922_s25 = smov [#allocation8]   ;;  %s1923_s27 = smov [#allocation11]  }
  0x17   : > { %s2474_s21 = scalar_select %p2035_p3, 1, 0 }
  0x18   : > { %p1412_p4 = pneg %p2035_p3  ;;  %s341_s26 = sshll.u32 %s1922_s25, 4  ;;  %s2050_s26 = int_to_ptr.vmem [resolvable:$true] %s341_s26 }
  0x19   : > { %2475 = sst [smem:[#allocation28_spill]] %s2474_s21  ;;  %s2052_s28 = sshll.u32 %s1923_s27, 4  ;;  %s369_s28 = int_to_ptr.vmem [resolvable:$true] %s2052_s28 }
  0x1a   : > { %p2046_p6 = pnand %p1412_p4, %p2030_p1  ;;  %s2477_s1 = sld [smem:[#allocation30_spill]] }
  0x1c   : > { %p2062_p8 = pneg %p2046_p6 }
  0x20   : > { %s1535_s11 = scalar_lea.hbm %s2477_s1, 256 }
  0x21   : > { %p1536_p7 = scmp.ne.s32.totalorder %s2477_s1, %s1535_s11  ;;  %p1542_p11 = scmp.lt.u32.totalorder %s1535_s11, %s2477_s1 }
  0x23   : > { %p1538_p9 = pnand %p2062_p8, %p1536_p7 }
  0x25   : > { %p1539_p10 = pneg %p1538_p9 }
  0x27   : > { %p1544_p12 = pnand %p1542_p11, %p1539_p10 }
  0x29   : > { %1547 = shalt.err (!%p1544_p12)
}
  0x2a   : > { %s1548_s29 = scalar_lea.vmem %s2039_s23, 256  ;;  %p1556_p4 = scmp.lt.s32.totalorder %s2039_s23, %s2039_s23 }
  0x2b   : > { %p1549_p13 = scmp.ne.s32.totalorder %s2039_s23, %s1548_s29  ;;  %p1557_p5 = scmp.lt.s32.totalorder %s1548_s29, %s1548_s29 }
  0x2d   : > { %p1551_p0 = pnand %p1549_p13, %p2062_p8  ;;  %p1558_p7 = por %p1557_p5, %p1556_p4 }
  0x2f   : > { %p1552_p2 = pneg %p1551_p0 }
  0x31   : > { %p1559_p9 = pnand %p1558_p7, %p1552_p2 }
  0x33   : > { %1562 = shalt.err (!%p1559_p9)
}
  0x34   : > { %s2463_s30 = smov 128   ;;  %s2465_s11 = smov 8  }
  0x35   : > { %1415 = dma.hbm_to_vmem [thread:$0]  (!%p2046_p6), %s2477_s1, 256, %s2039_s23, [#allocation6], %s2463_s30, %s2463_s30, %s2465_s11  }
  0x36   : > { %s1563_s29 = scalar_lea.hbm %s2447_s3, 512 }
  0x37   : > { %p1564_p5 = scmp.ne.s32.totalorder %s2447_s3, %s1563_s29  ;;  %p1570_p12 = scmp.lt.u32.totalorder %s1563_s29, %s2447_s3 }
  0x39   : > { %p1566_p10 = pnand %p1564_p5, %p2062_p8 }
  0x3b   : > { %p1567_p11 = pneg %p1566_p10 }
  0x3d   : > { %p1572_p13 = pnand %p1570_p12, %p1567_p11 }
  0x3f   : > { %1575 = shalt.err (!%p1572_p13)
}
  0x40   : > { %s1576_s23 = scalar_lea.vmem %s2050_s26, 512  ;;  %p1584_p7 = scmp.lt.s32.totalorder %s2050_s26, %s2050_s26 }
  0x41   : > { %p1577_p0 = scmp.ne.s32.totalorder %s2050_s26, %s1576_s23  ;;  %p1585_p9 = scmp.lt.s32.totalorder %s1576_s23, %s1576_s23 }
  0x43   : > { %p1579_p2 = pnand %p1577_p0, %p2062_p8  ;;  %p1586_p5 = por %p1585_p9, %p1584_p7 }
  0x45   : > { %p1580_p4 = pneg %p1579_p2 }
  0x47   : > { %p1587_p10 = pnand %p1586_p5, %p1580_p4 }
  0x49   : > { %1590 = shalt.err (!%p1587_p10)
}
  0x4a   : > { %1421 = dma.hbm_to_vmem [thread:$0]  (!%p2046_p6), %s2447_s3, 512, %s2050_s26, [#allocation9], %s2463_s30, %s2463_s30, %s2465_s11  }
  0x4b   : > { %s1591_s12 = scalar_lea.hbm %s2449_s5, 128 }
  0x4c   : > { %p1592_p11 = scmp.ne.s32.totalorder %s2449_s5, %s1591_s12  ;;  %p1598_p0 = scmp.lt.u32.totalorder %s1591_s12, %s2449_s5 }
  0x4e   : > { %p1594_p12 = pnand %p1592_p11, %p2062_p8 }
  0x50   : > { %p1595_p13 = pneg %p1594_p12 }
  0x52   : > { %p1600_p2 = pnand %p1598_p0, %p1595_p13 }
  0x54   : > { %1603 = shalt.err (!%p1600_p2)
}
  0x55   : > { %s1604_s23 = scalar_lea.vmem %s369_s28, 128  ;;  %p1612_p5 = scmp.lt.s32.totalorder %s369_s28, %s369_s28 }
  0x56   : > { %p1605_p4 = scmp.ne.s32.totalorder %s369_s28, %s1604_s23  ;;  %p1613_p10 = scmp.lt.s32.totalorder %s1604_s23, %s1604_s23 }
  0x58   : > { %p1607_p7 = pnand %p1605_p4, %p2062_p8  ;;  %p1614_p3 = por %p1613_p10, %p1612_p5 }
  0x5a   : > { %p1608_p9 = pneg %p1607_p7 }
  0x5c   : > { %p1615_p1 = pnand %p1614_p3, %p1608_p9 }
  0x5e   : > { %1618 = shalt.err (!%p1615_p1)
}
  0x5f   : > { %1427 = dma.hbm_to_vmem [thread:$0]  (!%p2046_p6), %s2449_s5, 128, %s369_s28, [#allocation12]  }
  0x60   : > { %s1926_s10 = smov [#allocation14]   ;;  %s1927_s21 = smov [#allocation7]  }
  0x61   : > { %s389_s16 = sshll.u32 %s1926_s10, 4  ;;  %s328_s12 = sshll.u32 %s1927_s21, 4  ;;  %s390_s16 = int_to_ptr.vmem [resolvable:$true] %s389_s16  ;;  %s329_s12 = int_to_ptr.vmem [resolvable:$true] %s328_s12 }
  0x62   : > { %s1619_s27 = scalar_lea.hbm %s2451_s7, 512 }
  0x63   : > { %p1620_p1 = scmp.ne.s32.totalorder %s2451_s7, %s1619_s27  ;;  %p1626_p12 = scmp.lt.u32.totalorder %s1619_s27, %s2451_s7 }
  0x65   : > { %p1622_p3 = pnand %p1620_p1, %p2062_p8 }
  0x67   : > { %p1623_p11 = pneg %p1622_p3 }
  0x69   : > { %p1628_p13 = pnand %p1626_p12, %p1623_p11 }
  0x6b   : > { %1631 = shalt.err (!%p1628_p13)
}
  0x6c   : > { %s1632_s28 = scalar_lea.vmem %s390_s16, 512  ;;  %p1640_p7 = scmp.lt.s32.totalorder %s390_s16, %s390_s16 }
  0x6d   : > { %p1633_p0 = scmp.ne.s32.totalorder %s390_s16, %s1632_s28  ;;  %p1641_p9 = scmp.lt.s32.totalorder %s1632_s28, %s1632_s28 }
  0x6f   : > { %p1635_p2 = pnand %p1633_p0, %p2062_p8  ;;  %p1642_p5 = por %p1641_p9, %p1640_p7 }
  0x71   : > { %p1636_p4 = pneg %p1635_p2 }
  0x73   : > { %p1643_p10 = pnand %p1642_p5, %p1636_p4 }
  0x75   : > { %1646 = shalt.err (!%p1643_p10)
}
  0x76   : > { %s2479_s9 = smov 128   ;;  %s1647_s25 = scalar_lea.hbm %s2446_s2, 256 }
  0x77   : > { %1433 = dma.hbm_to_vmem [thread:$0]  (!%p2046_p6), %s2451_s7, 512, %s390_s16, [#allocation15], %s2479_s9, %s2479_s9, %s2465_s11  }
  0x78   : > { %p1648_p1 = scmp.ne.s32.totalorder %s2446_s2, %s1647_s25  ;;  %p1654_p12 = scmp.lt.u32.totalorder %s1647_s25, %s2446_s2 }
  0x7a   : > { %p1650_p3 = pnand %p1648_p1, %p2062_p8 }
  0x7c   : > { %p1651_p11 = pneg %p1650_p3 }
  0x7e   : > { %p1656_p13 = pnand %p1654_p12, %p1651_p11 }
  0x80   : > { %1659 = shalt.err (!%p1656_p13)
}
  0x81   : > { %s1660_s28 = scalar_lea.vmem %s329_s12, 256  ;;  %p1668_p7 = scmp.lt.s32.totalorder %s329_s12, %s329_s12 }
  0x82   : > { %p1661_p0 = scmp.ne.s32.totalorder %s329_s12, %s1660_s28  ;;  %p1669_p9 = scmp.lt.s32.totalorder %s1660_s28, %s1660_s28 }
  0x84   : > { %p1663_p2 = pnand %p1661_p0, %p2062_p8  ;;  %p1670_p5 = por %p1669_p9, %p1668_p7 }
  0x86   : > { %p1664_p4 = pneg %p1663_p2 }
  0x88   : > { %p1671_p10 = pnand %p1670_p5, %p1664_p4 }
  0x8a   : > { %1674 = shalt.err (!%p1671_p10)
}
  0x8b   : > { %1418 = dma.hbm_to_vmem [thread:$0]  (!%p2046_p6), %s2446_s2, 256, %s329_s12, [#allocation6], %s2479_s9, %s2479_s9, %s2465_s11  }
  0x8c   : > { %s1928_s10 = smov [#allocation10]   ;;  %s1929_s22 = smov [#allocation13]  }
  0x8d   : > { %s354_s21 = sshll.u32 %s1928_s10, 4  ;;  %s379_s25 = sshll.u32 %s1929_s22, 4  ;;  %s355_s21 = int_to_ptr.vmem [resolvable:$true] %s354_s21  ;;  %s380_s25 = int_to_ptr.vmem [resolvable:$true] %s379_s25 }
  0x8e   : > { %s1675_s23 = scalar_lea.hbm %s2448_s4, 512 }
  0x8f   : > { %p1676_p1 = scmp.ne.s32.totalorder %s2448_s4, %s1675_s23  ;;  %p1682_p12 = scmp.lt.u32.totalorder %s1675_s23, %s2448_s4 }
  0x91   : > { %p1678_p3 = pnand %p1676_p1, %p2062_p8 }
  0x93   : > { %p1679_p11 = pneg %p1678_p3 }
  0x95   : > { %p1684_p13 = pnand %p1682_p12, %p1679_p11 }
  0x97   : > { %1687 = shalt.err (!%p1684_p13)
}
  0x98   : > { %s1688_s12 = scalar_lea.vmem %s355_s21, 512  ;;  %p1696_p7 = scmp.lt.s32.totalorder %s355_s21, %s355_s21 }
  0x99   : > { %p1689_p0 = scmp.ne.s32.totalorder %s355_s21, %s1688_s12  ;;  %p1697_p9 = scmp.lt.s32.totalorder %s1688_s12, %s1688_s12 }
  0x9b   : > { %p1691_p2 = pnand %p1689_p0, %p2062_p8  ;;  %p1698_p5 = por %p1697_p9, %p1696_p7 }
  0x9d   : > { %p1692_p4 = pneg %p1691_p2 }
  0x9f   : > { %p1699_p10 = pnand %p1698_p5, %p1692_p4 }
  0xa1   : > { %1702 = shalt.err (!%p1699_p10)
}
  0xa2   : > { %1424 = dma.hbm_to_vmem [thread:$0]  (!%p2046_p6), %s2448_s4, 512, %s355_s21, [#allocation9], %s2479_s9, %s2479_s9, %s2465_s11  }
  0xa3   : > { %s1703_s27 = scalar_lea.hbm %s2450_s6, 128 }
  0xa4   : > { %p1704_p1 = scmp.ne.s32.totalorder %s2450_s6, %s1703_s27  ;;  %p1710_p12 = scmp.lt.u32.totalorder %s1703_s27, %s2450_s6 }
  0xa6   : > { %p1706_p3 = pnand %p1704_p1, %p2062_p8 }
  0xa8   : > { %p1707_p11 = pneg %p1706_p3 }
  0xaa   : > { %p1712_p13 = pnand %p1710_p12, %p1707_p11 }
  0xac   : > { %1715 = shalt.err (!%p1712_p13)
}
  0xad   : > { %s1716_s16 = scalar_lea.vmem %s380_s25, 128  ;;  %p1724_p7 = scmp.lt.s32.totalorder %s380_s25, %s380_s25 }
  0xae   : > { %p1717_p0 = scmp.ne.s32.totalorder %s380_s25, %s1716_s16  ;;  %p1725_p9 = scmp.lt.s32.totalorder %s1716_s16, %s1716_s16 }
  0xb0   : > { %p1719_p2 = pnand %p1717_p0, %p2062_p8  ;;  %p1726_p5 = por %p1725_p9, %p1724_p7 }
  0xb2   : > { %p1720_p4 = pneg %p1719_p2 }
  0xb4   : > { %p1727_p10 = pnand %p1726_p5, %p1720_p4 }
  0xb6   : > { %1730 = shalt.err (!%p1727_p10)
}
  0xb7   : > { %1430 = dma.hbm_to_vmem [thread:$0]  (!%p2046_p6), %s2450_s6, 128, %s380_s25, [#allocation12]  }
  0xb8   : > { %s1930_s1 = smov [#allocation16]   ;;  %s1731_s27 = scalar_lea.hbm %s2452_s8, 512 }
  0xb9   : > { %s402_s30 = sshll.u32 %s1930_s1, 4  ;;  %p1732_p1 = scmp.ne.s32.totalorder %s2452_s8, %s1731_s27  ;;  %s403_s30 = int_to_ptr.vmem [resolvable:$true] %s402_s30 }
  0xba   : > { %p1738_p12 = scmp.lt.u32.totalorder %s1731_s27, %s2452_s8 }
  0xbb   : > { %p1734_p3 = pnand %p1732_p1, %p2062_p8 }
  0xbd   : > { %p1735_p11 = pneg %p1734_p3 }
  0xbf   : > { %p1740_p13 = pnand %p1738_p12, %p1735_p11 }
  0xc1   : > { %1743 = shalt.err (!%p1740_p13)
}
  0xc2   : > { %s1744_s25 = scalar_lea.vmem %s403_s30, 512  ;;  %p1752_p7 = scmp.lt.s32.totalorder %s403_s30, %s403_s30 }
  0xc3   : > { %p1745_p0 = scmp.ne.s32.totalorder %s403_s30, %s1744_s25  ;;  %p1753_p9 = scmp.lt.s32.totalorder %s1744_s25, %s1744_s25 }
  0xc5   : > { %p1747_p2 = pnand %p1745_p0, %p2062_p8  ;;  %p1754_p5 = por %p1753_p9, %p1752_p7 }
  0xc7   : > { %p1748_p4 = pneg %p1747_p2 }
  0xc9   : > { %p1755_p10 = pnand %p1754_p5, %p1748_p4 }
  0xcb   : > { %1758 = shalt.err (!%p1755_p10)
}
  0xcc   : > { %1436 = dma.hbm_to_vmem [thread:$0]  (!%p2046_p6), %s2452_s8, 512, %s403_s30, [#allocation15], %s2479_s9, %s2479_s9, %s2465_s11  }
  0xcd   : > { %s1240_s19 = sadd.s32 4294967294, %s1919_s18   ;;  %s46_s24 = sadd.s32 1, %s1915_s17 }
  0xce   : > { %p48_p8 = scmp.ge.s32.totalorder %s46_s24, 2  ;;  %s55_s12 = sadd.s32 1, %s1907_s15 }
  0xcf   : > { %p62_p1 = scmp.ne.s32.totalorder %s1907_s15, %s1903_s14  ;;  %p63_p3 = scmp.eq.s32.totalorder %s1919_s18, 0 }
  0xd0   : > { %s2504_s24 = smov (%p48_p8, %s46_s24), 0  ;;  %p68_p12 = scmp.ne.s32.totalorder %s1903_s14, %s1899_s13 }
  0xd1   : > { %p2241_p11 = por %p63_p3, %p62_p1  ;;  %s50_s30 = ssub.s32 %s1915_s17, %s2504_s24 }
  0xd2   : > { %s2481_s10 = sadd.s32 4294967295, %s1919_s18   ;;  %p53_p13 = scmp.eq.s32.totalorder %s50_s30, 0 }
  0xd3   : > { %p262_p6 = scmp.eq.s32.totalorder %s2481_s10, 1  ;;  %p2482_p0 = scmp.ne.s32.totalorder %s2473_s20, 0 }
  0xd4   : > { %p268_p7 = scmp.eq.s32.totalorder %s1240_s19, 1  ;;  %p1456_p5 = scmp.lt.s32.totalorder %s1919_s18, 2 }
  0xd5   : > { %p2253_p2 = por %p2482_p0, %p68_p12  ;;  %p2257_p4 = por %p262_p6, %p62_p1 }
  0xd6   : > { %s2262_s29 = scalar_select %p53_p13, %s1907_s15, %s55_s12  }
  0xd7   : > { %s2484_s27 = scalar_select %p2257_p4, 1, 0 }
  0xd8   : > { %p2264_p9 = por %p268_p7, %p68_p12  ;;  %s416_s26 = sand.u32 1, %s1907_s15  }
  0xd9   : > { %s1289_s28 = sshll.u32 %s1915_s17, 8  ;;  %s1251_s25 = sshll.u32 %s416_s26, 4 }
  0xda   : > { %s2485_s23 = scalar_select %p2264_p9, 1, 0 }
  0xdb   : > { %s2486_s0 = sld [smem:[#allocation29_spill]]  ;;  %s420_s19 = scalar_lea.vmem [#allocation2], %s1251_s25 }
  0xdc   : > { %s428_s12 = sshll.u32 %s420_s19, 4  ;;  %p2278_p10 = pnand %p1456_p5, %p2241_p11  ;;  %s2282_s12 = int_to_ptr.vmem [resolvable:$true] %s428_s12 }
  0xdd   : > { %s2284_s11 = scalar_lea.sflag [#allocation3], %s416_s26 }
  0xde   : > { %p1761_p1 = pneg %p2278_p10 }
  0xe1   : > { %s2274_s30 = scalar_lea.hbm %s2486_s0, %s1289_s28  ;;  %s1764_s25 = scalar_lea.hbm %s2486_s0, 512 }
  0xe2   : > { %s1759_s16 = scalar_lea.hbm %s2274_s30, 256  ;;  %p1765_p11 = scmp.lt.u32.totalorder %s2274_s30, %s2486_s0 }
  0xe3   : > { %p1760_p8 = scmp.ne.s32.totalorder %s2274_s30, %s1759_s16  ;;  %p1766_p6 = scmp.lt.u32.totalorder %s1764_s25, %s1759_s16 }
  0xe4   : > { %p1768_p0 = scmp.lt.u32.totalorder %s1759_s16, %s2274_s30 }
  0xe5   : > { %p1762_p3 = pnand %p1761_p1, %p1760_p8  ;;  %p1767_p13 = por %p1766_p6, %p1765_p11 }
  0xe7   : > { %p1763_p12 = pneg %p1762_p3  ;;  %p1769_p7 = por %p1768_p0, %p1767_p13 }
  0xe9   : > { %p1770_p5 = pnand %p1769_p7, %p1763_p12 }
  0xeb   : > { %1773 = shalt.err (!%p1770_p5)
}
  0xec   : > { %s1774_s26 = scalar_lea.vmem %s2282_s12, 256  ;;  %s1931_s28 = smov [#allocation2]  }
  0xed   : > { %p1775_p8 = scmp.ne.s32.totalorder %s2282_s12, %s1774_s26  ;;  %s1779_s1 = sshll.u32 %s1931_s28, 4  ;;  %s1780_s1 = int_to_ptr.vmem [resolvable:$false] %s1779_s1 }
  0xee   : > { %s1781_s21 = scalar_lea.vmem %s1780_s1, 512  ;;  %p1782_p4 = scmp.lt.s32.totalorder %s2282_s12, %s1780_s1 }
  0xef   : > { %p1777_p3 = pnand %p1775_p8, %p1761_p1  ;;  %p1783_p11 = scmp.lt.s32.totalorder %s1781_s21, %s1774_s26 }
  0xf1   : > { %p1778_p9 = pneg %p1777_p3  ;;  %p1784_p6 = por %p1783_p11, %p1782_p4 }
  0xf3   : > { %p1785_p13 = pnand %p1784_p6, %p1778_p9 }
  0xf5   : > { %1788 = shalt.err (!%p1785_p13)
}
  0xf6   : > { %s2488_s16 = smov 8   ;;  %s2489_s25 = sld [smem:[#allocation28_spill]] }
  0xf7   : > { %1440 = dma.hbm_to_vmem [thread:$0]  (!%p2278_p10), %s2274_s30, 256, %s2282_s12, %s2284_s11, %s2479_s9, %s2479_s9, %s2488_s16  }
  0xfc   : > { %p2490_p1 = scmp.ne.s32.totalorder %s2489_s25, 0 }
  0xfd   : > { %s2318_s19 = sand.u32 (!%p2490_p1), 1, %s1903_s14  }
  0xfe   : > { %440 = sbr.rel (%p2490_p1) target bundleno = 956 (0x3bc), region = 56  ;;  %s1255_s26 = sshll.u32 (!%p2490_p1), %s2318_s19, 4 }
  0xff   : > { %s443_s28 = scalar_lea.sflag (!%p2490_p1), [#allocation3], %s2318_s19  ;;  %s446_s10 = scalar_lea.vmem (!%p2490_p1), [#allocation2], %s1255_s26 }
 0x105   : > { %1870 = dma.done.wait (%p2253_p2), %s443_s28, 256  }
 0x106   : > { %1872 = vsyncadd (%p2253_p2), %s443_s28, 4294967040  ;;  %p2491_p4 = scmp.ne.s32.totalorder %s2473_s20, 0 }
 0x108   : > { %1874 = dma.done.wait (%p2491_p4), [#allocation6], 512  }
 0x109   : > { %1876 = vsyncadd (%p2491_p4), [#allocation6], 4294966784 }
 0x10a   : > { %1878 = dma.done.wait (%p2491_p4), [#allocation9], 1024  }
 0x10b   : > { %1880 = vsyncadd (%p2491_p4), [#allocation9], 4294966272 }
 0x10c   : > { %1882 = dma.done.wait (%p2491_p4), [#allocation12], 256  }
 0x10d   : > { %1884 = vsyncadd (%p2491_p4), [#allocation12], 4294967040 }
 0x10e   : > { %1886 = dma.done.wait (%p2491_p4), [#allocation15], 1024  }
 0x10f   : > { %1888 = vsyncadd (%p2491_p4), [#allocation15], 4294966272  ;;  %v1932_v0 = vmov 0   ;;  %vm543_vm0 = vcmask 1043456   ;;  %vm536_vm1 = vcmask 97280   ;;  %vm1933_vm2 = vmmov 1  }
 0x110   : > { %1531 = vset.pattern.permute.xlu0 %v1932_v0  ;;  %1532 = vset.pattern.permute.xlu1 %v1932_v0  ;;  %vm1355_vm3 = vmpackc.low %vm543_vm0, %vm1933_vm2  ;;  %v520_v1 = vld [vmem:[%s446_s10] sm:$0xff]  ;;  %v521_v2 = vld [vmem:[%s446_s10 + $0x8] sm:$0xf]  ;;  %vm652_vm4 = vcmask 130048   ;;  %v1934_v34 = vmov 0.0|0.0   ;;  %vm1935_vm5 = vmmov 0  }
 0x111   : > { %v522_v3 = vld [vmem:[#allocation5] sm:$0xff]  ;;  %v1354_v4 = vpack.c.bf16 %v521_v2, %v520_v1  ;;  %v524_v5 = vld [vmem:[#allocation7] sm:$0xff]  ;;  %v525_v6 = vld [vmem:[#allocation7 + $0x8] sm:$0xff]  ;;  %v1936_v35 = vmov 0.0   ;;  %vm970_vm6 = vcmask 523264   ;;  %vm761_vm7 = vcmask 261120  }
 0x112   : > { %1320 = vmatprep.mubr.msk.f32.mxu0 %vm536_vm1, %v522_v3  ;;  %528 = vperm.xlu0 %1531, %v524_v5   ;;  %v523_v7 = vld [vmem:[#allocation5 + $0x8] sm:$0xff]  ;;  %v630_v8 = vld [vmem:[#allocation10 + $0x10] sm:$0xff]  ;;  %v843_v10 = vld [vmem:[#allocation16 + $0x10] sm:$0xff]  ;;  %s2492_s20 = sld [smem:[#allocation27_spill]]  ;;  %vm1006_vm8 = vcmask 519168   ;;  %s519_s11 = scalar_lea.vmem [#allocation18], %s1255_s26 }
 0x113   : > { %1356 = vmatprep.subr.msk.bf16.mxu0 %vm1355_vm3, %v1354_v4  ;;  %v841_v9 = vld [vmem:[#allocation16] sm:$0xff]  ;;  %v755_v11 = vld [vmem:[#allocation13] sm:$0x1f]  ;;  %v624_v12 = vld [vmem:[#allocation8] sm:$0xff]  ;;  %s1045_s9 = sshll.u32 %s519_s11, 4  ;;  %s2493_s1 = sld [smem:[#allocation32_spill]]  ;;  %s2358_s9 = int_to_ptr.vmem [resolvable:$true] %s1045_s9 }
 0x114   : > { %1359 = vmatpush3.bf16.msk.msra.mxu0 %vm1355_vm3, %v1354_v4  ;;  %1327 = vmatprep.mubr.msk.f32.mxu1 %vm652_vm4, %v624_v12  ;;  %v628_v13 = vld [vmem:[#allocation10] sm:$0xff]  ;;  %v629_v14 = vld [vmem:[#allocation10 + $0x8] sm:$0xff]  ;;  %v631_v15 = vld [vmem:[#allocation10 + $0x18] sm:$0xff]  ;;  %s1017_s16 = scalar_lea.sflag [#allocation19], %s2318_s19  ;;  %s1789_s25 = scalar_lea.vmem %s2358_s9, 256 }
 0x115   : > { %634 = vperm.xlu1 %1532, %v628_v13   ;;  %v842_v16 = vld [vmem:[#allocation16 + $0x8] sm:$0xff]  ;;  %v844_v17 = vld [vmem:[#allocation16 + $0x18] sm:$0xff]  ;;  %v626_v28 = vld [vmem:[#allocation8 + $0x10] sm:$0xff]  ;;  %1364 = vmatprep.subr.bf16.mxu0 %v1934_v34  ;;  %p1790_p2 = scmp.ne.s32.totalorder %s2358_s9, %s1789_s25  ;;  %p2494_p9 = scmp.ne.s32.totalorder %s2484_s27, 0 }
 0x116   : > { %533 = vperm.xlu0 %1531, %v525_v6   ;;  %v625_v27 = vld [vmem:[#allocation8 + $0x8] sm:$0xff]  ;;  %v627_v29 = vld [vmem:[#allocation8 + $0x18] sm:$0xff]  ;;  %v837_v30 = vld [vmem:[#allocation14] sm:$0xff]  ;;  %s1937_s26 = smov [#allocation18]  }
 0x117   : > { %1321 = vmatmul.mubr.msk.f32.vlgmr.msra.gmra.mrb[0].mxu0 %vm536_vm1, %v523_v7  ;;  %v838_v31 = vld [vmem:[#allocation14 + $0x8] sm:$0xff]  ;;  %v839_v32 = vld [vmem:[#allocation14 + $0x10] sm:$0xff]  ;;  %v840_v33 = vld [vmem:[#allocation14 + $0x18] sm:$0xff]  ;;  %p1791_p10 = pnand %p1790_p2, %p2494_p9  ;;  %s1793_s28 = sshll.u32 %s1937_s26, 4  ;;  %s1794_s28 = int_to_ptr.vmem [resolvable:$false] %s1793_s28 }
 0x118   : > { %1341 = vmatprep.mubr.msk.f32.mxu0 %vm1935_vm5, %v1936_v35  ;;  %v754_v0 = vld [vmem:[#allocation11] sm:$0x1f]  ;;  %s1294_s22 = sshll.u32 %s2492_s20, 8  ;;  %s1795_s10 = scalar_lea.vmem %s1794_s28, 512 }
 0x119   : > { %639 = vperm.xlu1 %1532, %v629_v14   ;;  %s2364_s21 = scalar_lea.hbm %s2493_s1, %s1294_s22  ;;  %p1792_p12 = pneg %p1791_p10 }
 0x11a   : > { %644 = vperm.xlu0 %1531, %v630_v8   ;;  %p1796_p0 = scmp.lt.s32.totalorder %s2358_s9, %s1794_s28  ;;  %p1797_p7 = scmp.lt.s32.totalorder %s1795_s10, %s1789_s25 }
 0x11c   : > { %p1798_p5 = por %p1797_p7, %p1796_p0 }
 0x11d   : > { %649 = vperm.xlu1 %1532, %v631_v15  }
 0x11e   : > { %847 = vperm.xlu0 %1531, %v841_v9   ;;  %p1799_p8 = pnand %p1798_p5, %p1792_p12 }
 0x121   : > { %852 = vperm.xlu1 %1532, %v842_v16  }
 0x122   : > { %857 = vperm.xlu0 %1531, %v843_v10  }
 0x125   : > { %862 = vperm.xlu1 %1532, %v844_v17  }
 0x126   : > { %758 = vperm.xlu0 %1531, %v755_v11  }
 0x191   : > { %v529_v18 = vpop.permute.xlu0 %528 }
 0x194   : > { %v635_v36 = vpop.permute.xlu1 %634 }
 0x195   : > { %v534_v19 = vpop.permute.xlu0 %533 }
 0x198   : > { %v640_v37 = vpop.permute.xlu1 %639 }
 0x199   : > { %v645_v40 = vpop.permute.xlu0 %644 }
 0x19c   : > { %v650_v38 = vpop.permute.xlu1 %649 }
 0x19d   : > { %v848_v52 = vpop.permute.xlu0 %847 }
 0x1a0   : > { %v853_v49 = vpop.permute.xlu1 %852 }
 0x1a1   : > { %v858_v1 = vpop.permute.xlu0 %857 }
 0x1a4   : > { %v863_v61 = vpop.permute.xlu1 %862 }
 0x1ea   : > { %v1322_v20 = vpop.f32.mrb[0].mxu0 }
 0x1eb   : > { %v619_v21 = vadd.f32 %v1322_v20, %v534_v19  ;;  %v613_v22 = vpop.f32.mrb[1].mxu0 }
 0x1ec   : > { %v614_v23 = vadd.f32 %v613_v22, %v529_v18 }
 0x1ed   : > { %v623_v24 = vmax.f32 %v619_v21, 0.0 }
 0x1ee   : > { %v622_v25 = vmax.f32 %v614_v23, 0.0 }
 0x1f0   : > { %v1360_v26 = vpack.c.bf16 %v623_v24, %v622_v25 }
 0x1f2   : > { %1361 = vmatprep.subr.bf16.mxu1 %v1360_v26 }
 0x1f3   : > { %1363 = vmatpush3.bf16.msra.mxu1 %v1360_v26 }
 0x1f4   : > { %1371 = vmatprep.subr.bf16.mxu1 %v1360_v26 }
 0x1f6   : > { %1328 = vmatmul.mubr.msk.f32.vlgmr.msra.gmra.mrb[0].mxu1 %vm652_vm4, %v625_v27 }
 0x1f7   : > { %1373 = vmatpush3.bf16.msra.mxu1 %v1360_v26  ;;  %1330 = vmatprep.mubr.msk.f32.mxu1 %vm652_vm4, %v626_v28 }
 0x1fa   : > { %1331 = vmatmul.mubr.msk.f32.gmra.mrb[2].mxu1 %vm652_vm4, %v627_v29 }
 0x1fb   : > { %1348 = vmatprep.mubr.msk.f32.mxu1 %vm652_vm4, %v837_v30 }
 0x1fe   : > { %1349 = vmatmul.mubr.msk.f32.vlgmr.msra.gmra.mrb[4].mxu1 %vm652_vm4, %v838_v31 }
 0x1ff   : > { %1351 = vmatprep.mubr.msk.f32.mxu1 %vm652_vm4, %v839_v32 }
 0x202   : > { %1352 = vmatmul.mubr.msk.f32.gmra.mrb[6].mxu1 %vm652_vm4, %v840_v33 }
 0x2c9   : > { %v1329_v39 = vpop.f32.mrb[0].mxu1 }
 0x2ca   : > { %v737_v41 = vadd.f32 %v1329_v39, %v640_v37  ;;  %v731_v42 = vpop.f32.mrb[1].mxu1 }
 0x2cb   : > { %v732_v43 = vadd.f32 %v731_v42, %v635_v36 }
 0x2cc   : > { %v751_v44 = vmax.f32 %v737_v41, 0.0 }
 0x2cd   : > { %v750_v45 = vmax.f32 %v732_v43, 0.0  ;;  %v1332_v46 = vpop.f32.mrb[2].mxu1 }
 0x2ce   : > { %v747_v47 = vadd.f32 %v1332_v46, %v650_v38  ;;  %v741_v48 = vpop.f32.mrb[3].mxu1 }
 0x2cf   : > { %v1365_v50 = vpack.c.bf16 %v751_v44, %v750_v45  ;;  %v742_v51 = vadd.f32 %v741_v48, %v645_v40 }
 0x2d0   : > { %v753_v53 = vmax.f32 %v747_v47, 0.0 }
 0x2d1   : > { %v752_v54 = vmax.f32 %v742_v51, 0.0  ;;  %1366 = vmatpush3.bf16.msra.mxu0 %v1365_v50  ;;  %v1350_v55 = vpop.f32.mrb[4].mxu1 }
 0x2d2   : > { %v949_v56 = vadd.f32 %v1350_v55, %v853_v49  ;;  %v943_v57 = vpop.f32.mrb[5].mxu1  ;;  %1367 = vmatprep.subr.bf16.mxu0 %v1934_v34 }
 0x2d3   : > { %v1368_v58 = vpack.c.bf16 %v753_v53, %v752_v54  ;;  %v944_v59 = vadd.f32 %v943_v57, %v848_v52 }
 0x2d4   : > { %v963_v60 = vmax.f32 %v949_v56, 0.0 }
 0x2d5   : > { %v962_v62 = vmax.f32 %v944_v59, 0.0  ;;  %1369 = vmatpush3.bf16.msra.mxu0 %v1368_v58  ;;  %v1353_v63 = vpop.f32.mrb[6].mxu1 }
 0x2d6   : > { %v967_v2 = vmul.f32 %v963_v60, %v963_v60  ;;  %v959_v3 = vadd.f32 %v1353_v63, %v863_v61  ;;  %v953_v4 = vpop.f32.mrb[7].mxu1 }
 0x2d7   : > { %v966_v5 = vmul.f32 %v962_v62, %v962_v62  ;;  %v954_v6 = vadd.f32 %v953_v4, %v858_v1 }
 0x2d8   : > { %v972_v7 = vsel %vm970_vm6, %v967_v2, 0.0  ;;  %v965_v8 = vmax.f32 %v959_v3, 0.0  ;;  %1342 = vmatmul.mubr.msk.f32.vlgmr.msra.gmra.mrb[2].mxu0 %vm761_vm7, %v754_v0 }
 0x2d9   : > { %v971_v9 = vsel %vm970_vm6, %v966_v5, 0.0  ;;  %v964_v10 = vmax.f32 %v954_v6, 0.0 }
 0x2da   : > { %v973_v11 = vadd.f32 %v972_v7, %v971_v9  ;;  %v969_v12 = vmul.f32 %v965_v8, %v965_v8 }
 0x2db   : > { %v968_v13 = vmul.f32 %v964_v10, %v964_v10 }
 0x2dc   : > { %v976_v16 = vsel %vm970_vm6, %v969_v12, 0.0 }
 0x2dd   : > { %v974_v14 = vsel %vm970_vm6, %v968_v13, 0.0 }
 0x2de   : > { %v975_v15 = vadd.f32 %v974_v14, %v973_v11 }
 0x2e0   : > { %v977_v17 = vadd.f32 %v976_v16, %v975_v15 }
 0x2e2   : > { %v978_v18 = vrot.slane %v977_v17, 4 }
 0x2e4   : > { %v979_v19 = vadd.f32 %v978_v18, %v977_v17 }
 0x2e6   : > { %v980_v20 = vrot.slane %v979_v19, 2 }
 0x2e8   : > { %v981_v21 = vadd.f32 %v980_v20, %v979_v19 }
 0x2ea   : > { %v982_v22 = vrot.slane %v981_v21, 1 }
 0x2ec   : > { %v983_v23 = vadd.f32 %v982_v22, %v981_v21 }
 0x2ee   : > { %v984_v24 = vadd.f32 1e-12, %v983_v23 }
 0x2f0   : > { %1533 = vrsqrt.f32 %v984_v24 }
 0x2fa   : > { %v1534_v25 = vpop.eup %1533 }
 0x2fb   : > { %v986_v26 = vmul.f32 %v1534_v25, %v962_v62  ;;  %v987_v27 = vmul.f32 %v1534_v25, %v963_v60  ;;  %v988_v28 = vmul.f32 %v1534_v25, %v964_v10  ;;  %v989_v29 = vmul.f32 %v1534_v25, %v965_v8 }
 0x2fd   : > { %v1290_v30 = vpack.c.bf16 %v986_v26, %v986_v26  ;;  %v1291_v31 = vpack.c.bf16 %v987_v27, %v987_v27  ;;  %v1292_v32 = vpack.c.bf16 %v988_v28, %v988_v28  ;;  %v1293_v33 = vpack.c.bf16 %v989_v29, %v989_v29 }
 0x2ff   : > { %1007 = vst.msk [vmem:[%s519_s11] sm:$0xf] %vm1006_vm8, %v1290_v30  ;;  %1008 = vst.msk [vmem:[%s519_s11 + $0x4] sm:$0xf] %vm1006_vm8, %v1291_v31 }
 0x300   : > { %1009 = vst.msk [vmem:[%s519_s11 + $0x8] sm:$0xf] %vm1006_vm8, %v1292_v32  ;;  %1010 = vst.msk [vmem:[%s519_s11 + $0xc] sm:$0xf] %vm1006_vm8, %v1293_v33 }
 0x301   : > { %1802 = shalt.err (!%p1799_p8)
}
 0x302   : > { %s1803_s11 = scalar_lea.hbm %s2364_s21, 256  ;;  %s1807_s12 = scalar_lea.hbm %s2493_s1, 512 }
 0x303   : > { %p1804_p3 = scmp.ne.s32.totalorder %s2364_s21, %s1803_s11  ;;  %p1808_p13 = scmp.lt.u32.totalorder %s2364_s21, %s2493_s1 }
 0x304   : > { %p1809_p1 = scmp.lt.u32.totalorder %s1807_s12, %s1803_s11  ;;  %p1811_p2 = scmp.lt.u32.totalorder %s1803_s11, %s2364_s21 }
 0x305   : > { %p1805_p11 = pnand %p1804_p3, %p2494_p9 }
 0x306   : > { %p1810_p4 = por %p1809_p1, %p1808_p13 }
 0x307   : > { %p1806_p6 = pneg %p1805_p11 }
 0x308   : > { %p1812_p10 = por %p1811_p2, %p1810_p4 }
 0x30a   : > { %p1813_p12 = pnand %p1812_p10, %p1806_p6 }
 0x30c   : > { %1816 = shalt.err (!%p1813_p12)
}
 0x30d   : > { %s1938_s25 = smov 64   ;;  %s1939_s10 = smov 4   ;;  %v759_v34 = vpop.permute.xlu0 %758  ;;  %vm835_vm9 = vcmask 520192  }
 0x30e   : > { %1409 = dma.vmem_to_hbm [thread:$0]  (%p2494_p9), %s2358_s9, 256, %s2364_s21, %s1017_s16, %s1938_s25, %s1938_s25, %s1939_s10  }
 0x30f   : > { %s1264_s22 = sshll.u32 %s2318_s19, 3  ;;  %s1284_s30 = sshll.u32 %s2492_s20, 7 }
 0x310   : > { %s512_s12 = scalar_lea.vmem [#allocation17], %s1264_s22  ;;  %s2495_s0 = sld [smem:[#allocation31_spill]] }
 0x311   : > { %s1031_s11 = sshll.u32 %s512_s12, 4  ;;  %s1012_s9 = scalar_lea.sflag [#allocation4], %s2318_s19  ;;  %s2397_s11 = int_to_ptr.vmem [resolvable:$true] %s1031_s11 }
 0x312   : > { %s1817_s20 = scalar_lea.vmem %s2397_s11, 128  ;;  %s1940_s21 = smov [#allocation17]  }
 0x313   : > { %p1818_p0 = scmp.ne.s32.totalorder %s2397_s11, %s1817_s20  ;;  %s1821_s16 = sshll.u32 %s1940_s21, 4  ;;  %s1822_s16 = int_to_ptr.vmem [resolvable:$false] %s1821_s16 }
 0x314   : > { %s1823_s25 = scalar_lea.vmem %s1822_s16, 256  ;;  %p1824_p8 = scmp.lt.s32.totalorder %s2397_s11, %s1822_s16 }
 0x315   : > { %p1819_p7 = pnand %p1818_p0, %p2494_p9  ;;  %p1825_p3 = scmp.lt.s32.totalorder %s1823_s25, %s1817_s20 }
 0x316   : > { %s2395_s1 = scalar_lea.hbm %s2495_s0, %s1284_s30 }
 0x317   : > { %p1820_p5 = pneg %p1819_p7  ;;  %p1826_p11 = por %p1825_p3, %p1824_p8 }
 0x319   : > { %p1827_p6 = pnand %p1826_p11, %p1820_p5 }
 0x3ab   : > { %v831_v35 = vpop.f32.mrb[2].mxu0 }
 0x3ac   : > { %v832_v36 = vadd.f32 %v831_v35, %v759_v34  ;;  %v1343_v37 = vpop.f32.mrb[3].mxu0 }
 0x3ae   : > { %836 = vst.msk [vmem:[%s512_s12] sm:$0x1f] %vm835_vm9, %v832_v36 }
 0x3af   : > { %1830 = shalt.err (!%p1827_p6)
}
 0x3b0   : > { %s1831_s19 = scalar_lea.hbm %s2395_s1, 128  ;;  %s1835_s30 = scalar_lea.hbm %s2495_s0, 256 }
 0x3b1   : > { %p1832_p13 = scmp.ne.s32.totalorder %s2395_s1, %s1831_s19  ;;  %p1836_p2 = scmp.lt.u32.totalorder %s2395_s1, %s2495_s0 }
 0x3b2   : > { %p1837_p10 = scmp.lt.u32.totalorder %s1835_s30, %s1831_s19  ;;  %p1839_p0 = scmp.lt.u32.totalorder %s1831_s19, %s2395_s1 }
 0x3b3   : > { %p1833_p1 = pnand %p1832_p13, %p2494_p9 }
 0x3b4   : > { %p1838_p12 = por %p1837_p10, %p1836_p2 }
 0x3b5   : > { %p1834_p4 = pneg %p1833_p1 }
 0x3b6   : > { %p1840_p7 = por %p1839_p0, %p1838_p12 }
 0x3b8   : > { %p1841_p5 = pnand %p1840_p7, %p1834_p4 }
 0x3ba   : > { %1844 = shalt.err (!%p1841_p5)
}
 0x3bb   : > { %1408 = dma.vmem_to_hbm [thread:$0]  (%p2494_p9), %s2397_s11, 128, %s2395_s1, %s1012_s9  }
 0x3bc PF: > { %s1060_s28 = sand.u32 1, %s1899_s13   ;;  %p2496_p8 = scmp.ne.s32.totalorder %s2485_s23, 0 }
 0x3bd   : > { %p2497_p3 = scmp.ge.s32.totalorder %s1919_s18, 2  ;;  %s1061_s20 = scalar_lea.sflag [#allocation4], %s1060_s28 }
 0x3bf   : > { %p1442_p11 = pnand %p2497_p3, %p2496_p8 }
 0x3c1   : > { %1890 = dma.done.wait (!%p1442_p11), %s1061_s20, 128  }
 0x3c2   : > { %1892 = vsyncadd (!%p1442_p11), %s1061_s20, 4294967168  ;;  %s1070_s21 = scalar_lea.sflag [#allocation19], %s1060_s28 }
 0x3c3   : > { %1894 = dma.done.wait (!%p1442_p11), %s1070_s21, 256  }
 0x3c4   : > { %1896 = vsyncadd (!%p1442_p11), %s1070_s21, 4294967040  ;;  %s34_s18 = sadd.s32 1, %s1919_s18   ;;  %s2498_s13 = smov %s1903_s14 }
 0x3c5   : > { %p31_p6 = scmp.ge.s32.totalorder %s34_s18, 4   ;;  %s2499_s14 = smov %s1907_s15 }
 0x3c6   : > { %s2500_s15 = smov %s2262_s29  ;;  %s2501_s16 = smov %s1915_s17 }
 0x3c7   : > { %s2502_s17 = smov %s2504_s24  ;;  %33 = sbr.rel (!%p31_p6) target bundleno = 17 (0x11), region = 150 }
 0x3ce   :  { %1075 = vsyncpa [#allocation3], 1 }
 0x3cf   :  { %1077 = vsyncpa [#allocation3 + $0x1], 1 }
 0x3d0   :  { %1078 = vsyncpa [#allocation6], 1 }
 0x3d1   :  { %1079 = vsyncpa [#allocation9], 1 }
 0x3d2   :  { %1080 = vsyncpa [#allocation12], 1 }
 0x3d3   :  { %1081 = vsyncpa [#allocation15], 1 }
 0x3d4   :  { %1082 = vsyncpa [#allocation4], 1 }
 0x3d5   :  { %1084 = vsyncpa [#allocation4 + $0x1], 1 }
 0x3d6   :  { %1085 = vsyncpa [#allocation19], 1 }
 0x3d7   :  { %1087 = vsyncpa [#allocation19 + $0x1], 1 }

// kernel: semi_spnet_forward.6
= control target key start
LH: loop header
LB: loop body
LE: loop exit
PB: predicated region body
PF: predicated region fallthrough
CT: control target
= control target key end

     0   :  { %7 = vsyncpa [#allocation3], 0  ;;  %s1021_s0 = inlined_call_operand.hbm [shape: bf16[2,32,64], index: 0, kind: input, shape index: {}]   ;;  %s1022_s1 = inlined_call_operand.hbm [shape: bf16[2,32,64], index: 1, kind: input, shape index: {}]   ;;  %s1023_s2 = inlined_call_operand.hbm [shape: f32[2,64,64], index: 2, kind: output, shape index: {}]  }
   0x1   :  { %9 = vsyncpa [#allocation3 + $0x1], 0 }
   0x2   :  { %10 = vsyncpa [#allocation6], 0 }
   0x3   :  { %12 = vsyncpa [#allocation6 + $0x1], 0 }
   0x4   :  { %13 = vsyncpa [#allocation4], 0 }
   0x5   :  { %15 = vsyncpa [#allocation4 + $0x1], 0  ;;  %s776_s9 = smov 0   ;;  %s778_s10 = smov 0  }
   0x6   :  { %s780_s11 = smov 0   ;;  %s782_s12 = smov 0  }
   0x7   :  { %s784_s13 = smov 0   ;;  %s786_s14 = smov 0  }
   0x8 LB: > { %s478_s15 = sadd.s32 4294967295, %s752_s14   ;;  %s479_s16 = sadd.s32 4294967294, %s752_s14   ;;  %s752_s14 = sphi %s786_s14, %s21_s14   ;;  %s748_s13 = sphi %s784_s13, %s1041_s13   ;;  %s744_s12 = sphi %s782_s12, %s1040_s12   ;;  %s740_s11 = sphi %s780_s11, %s1039_s11   ;;  %s736_s10 = sphi %s778_s10, %s1038_s10   ;;  %s732_s9 = sphi %s776_s9, %s1037_s9  }
   0x9   : > { %s33_s17 = sadd.s32 1, %s748_s13  ;;  %s40_s18 = sadd.s32 1, %s740_s11 }
   0xa   : > { %p35_p0 = scmp.ge.s32.totalorder %s33_s17, 2  ;;  %p47_p1 = scmp.ne.s32.totalorder %s740_s11, %s736_s10 }
   0xb   : > { %p48_p2 = scmp.eq.s32.totalorder %s752_s14, 0  ;;  %p53_p3 = scmp.ne.s32.totalorder %s736_s10, %s732_s9 }
   0xc   : > { %s1043_s17 = smov (%p35_p0, %s33_s17), 0  ;;  %p54_p5 = scmp.eq.s32.totalorder %s478_s15, 0 }
   0xd   : > { %p817_p4 = por %p48_p2, %p47_p1  ;;  %s37_s20 = ssub.s32 %s748_s13, %s1043_s17 }
   0xe   : > { %p107_p6 = scmp.eq.s32.totalorder %s478_s15, 1  ;;  %p38_p7 = scmp.eq.s32.totalorder %s37_s20, 0 }
   0xf   : > { %p823_p8 = por %p54_p5, %p53_p3  ;;  %p113_p10 = scmp.eq.s32.totalorder %s479_s16, 1 }
  0x10   : > { %p827_p9 = por %p107_p6, %p47_p1  ;;  %p547_p13 = scmp.lt.s32.totalorder %s752_s14, 2 }
  0x11   : > { %s1027_s21 = scalar_select %p823_p8, 1, 0 }
  0x12   : > { %s1028_s22 = scalar_select %p827_p9, 1, 0 }
  0x13   : > { %s832_s23 = scalar_select %p38_p7, %s740_s11, %s40_s18  }
  0x14   : > { %p834_p11 = por %p113_p10, %p53_p3  ;;  %s841_s25 = sand.u32 1, %s740_s11  }
  0x15   : > { %s482_s26 = sshll.u32 %s841_s25, 4  ;;  %s505_s27 = sshll.u32 %s748_s13, 8 }
  0x16   : > { %s1029_s24 = scalar_select %p834_p11, 1, 0 }
  0x17   : > { %s850_s30 = scalar_lea.hbm %s1021_s0, %s505_s27  ;;  %s137_s3 = scalar_lea.vmem [#allocation2], %s482_s26 }
  0x18   : > { %s144_s4 = sshll.u32 %s137_s3, 4  ;;  %p858_p0 = pnand %p547_p13, %p817_p4  ;;  %s854_s4 = int_to_ptr.vmem [resolvable:$true] %s144_s4 }
  0x19   : > { %s134_s6 = scalar_lea.sflag [#allocation3], %s841_s25  ;;  %s606_s7 = scalar_lea.hbm %s850_s30, 256 }
  0x1a   : > { %p607_p2 = scmp.ne.s32.totalorder %s850_s30, %s606_s7  ;;  %p608_p3 = pneg %p858_p0 }
  0x1b   : > { %s611_s16 = scalar_lea.hbm %s1021_s0, 512  ;;  %p612_p4 = scmp.lt.u32.totalorder %s850_s30, %s1021_s0 }
  0x1c   : > { %p609_p5 = pnand %p608_p3, %p607_p2  ;;  %p613_p7 = scmp.lt.u32.totalorder %s611_s16, %s606_s7 }
  0x1d   : > { %p615_p13 = scmp.lt.u32.totalorder %s606_s7, %s850_s30 }
  0x1e   : > { %p610_p6 = pneg %p609_p5  ;;  %p614_p10 = por %p613_p7, %p612_p4 }
  0x20   : > { %p616_p12 = por %p615_p13, %p614_p10 }
  0x22   : > { %p617_p1 = pnand %p616_p12, %p610_p6 }
  0x24   : > { %620 = shalt.err (!%p617_p1)
}
  0x25   : > { %s621_s20 = scalar_lea.vmem %s854_s4, 256  ;;  %s754_s28 = smov [#allocation2]  }
  0x26   : > { %p622_p2 = scmp.ne.s32.totalorder %s854_s4, %s621_s20  ;;  %s626_s29 = sshll.u32 %s754_s28, 4  ;;  %s627_s29 = int_to_ptr.vmem [resolvable:$false] %s626_s29 }
  0x27   : > { %s628_s3 = scalar_lea.vmem %s627_s29, 512  ;;  %p629_p9 = scmp.lt.s32.totalorder %s854_s4, %s627_s29 }
  0x28   : > { %p624_p5 = pnand %p622_p2, %p608_p3  ;;  %p630_p4 = scmp.lt.s32.totalorder %s628_s3, %s621_s20 }
  0x2a   : > { %p625_p11 = pneg %p624_p5  ;;  %p631_p7 = por %p630_p4, %p629_p9 }
  0x2c   : > { %p632_p10 = pnand %p631_p7, %p625_p11 }
  0x2e   : > { %635 = shalt.err (!%p632_p10)
}
  0x2f   : > { %s755_s7 = smov 64   ;;  %s756_s8 = smov 4  }
  0x30   : > { %539 = dma.hbm_to_vmem [thread:$0]  (!%p858_p0), %s850_s30, 256, %s854_s4, %s134_s6, %s755_s7, %s755_s7, %s756_s8  }
  0x31   : > { %p174_p9 = scmp.lt.s32.totalorder %s752_s14, 3  ;;  %s900_s18 = scalar_lea.hbm %s1022_s1, %s505_s27 }
  0x32   : > { %p1031_p11 = scmp.ge.s32.totalorder %s752_s14, 1  ;;  %s158_s20 = scalar_lea.vmem [#allocation5], %s482_s26 }
  0x33   : > { %s166_s28 = sshll.u32 %s158_s20, 4  ;;  %s155_s30 = scalar_lea.sflag [#allocation6], %s841_s25  ;;  %s910_s28 = int_to_ptr.vmem [resolvable:$true] %s166_s28 }
  0x34   : > { %p904_p12 = pnand %p1031_p11, %p174_p9  ;;  %s636_s4 = scalar_lea.hbm %s900_s18, 256 }
  0x35   : > { %p637_p1 = scmp.ne.s32.totalorder %s900_s18, %s636_s4  ;;  %s641_s29 = scalar_lea.hbm %s1022_s1, 512 }
  0x36   : > { %p642_p2 = scmp.lt.u32.totalorder %s900_s18, %s1022_s1  ;;  %p643_p5 = scmp.lt.u32.totalorder %s641_s29, %s636_s4 }
  0x37   : > { %p639_p6 = pnand %p637_p1, %p608_p3  ;;  %p645_p7 = scmp.lt.u32.totalorder %s636_s4, %s900_s18 }
  0x38   : > { %p644_p4 = por %p643_p5, %p642_p2 }
  0x39   : > { %p640_p13 = pneg %p639_p6 }
  0x3a   : > { %p646_p10 = por %p645_p7, %p644_p4 }
  0x3c   : > { %p647_p9 = pnand %p646_p10, %p640_p13 }
  0x3e   : > { %650 = shalt.err (!%p647_p9)
}
  0x3f   : > { %s651_s26 = scalar_lea.vmem %s910_s28, 256  ;;  %s757_s16 = smov [#allocation5]  }
  0x40   : > { %p652_p11 = scmp.ne.s32.totalorder %s910_s28, %s651_s26  ;;  %s656_s20 = sshll.u32 %s757_s16, 4  ;;  %s657_s20 = int_to_ptr.vmem [resolvable:$false] %s656_s20 }
  0x41   : > { %s658_s27 = scalar_lea.vmem %s657_s20, 512  ;;  %p659_p8 = scmp.lt.s32.totalorder %s910_s28, %s657_s20 }
  0x42   : > { %p654_p1 = pnand %p652_p11, %p608_p3  ;;  %p660_p2 = scmp.lt.s32.totalorder %s658_s27, %s651_s26 }
  0x44   : > { %p655_p6 = pneg %p654_p1  ;;  %p661_p5 = por %p660_p2, %p659_p8 }
  0x46   : > { %p662_p4 = pnand %p661_p5, %p655_p6 }
  0x48   : > { %665 = shalt.err (!%p662_p4)
}
  0x49   : > { %542 = dma.hbm_to_vmem [thread:$0]  (!%p858_p0), %s900_s18, 256, %s910_s28, %s155_s30, %s755_s7, %s755_s7, %s756_s8  }
  0x4a   : > { %178 = sbr.rel (%p904_p12) target bundleno = 430 (0x1ae), region = 28  ;;  %s944_s4 = sand.u32 (!%p904_p12), 1, %s736_s10  }
  0x4b   : > { %s489_s6 = sshll.u32 (!%p904_p12), %s944_s4, 4  ;;  %s181_s29 = scalar_lea.sflag (!%p904_p12), [#allocation3], %s944_s4 }
  0x4c   : > { %s184_s5 = scalar_lea.vmem (!%p904_p12), [#allocation2], %s489_s6  ;;  %p1033_p8 = scmp.ne.s32.totalorder (!%p904_p12), %s1027_s21, 0 }
  0x51   : > { %719 = dma.done.wait (%p1033_p8), %s181_s29, 256  }
  0x52   : > { %721 = vsyncadd (%p1033_p8), %s181_s29, 4294967040  ;;  %s190_s25 = scalar_lea.sflag [#allocation6], %s944_s4  ;;  %s193_s7 = scalar_lea.vmem [#allocation5], %s489_s6 }
  0x53   : > { %723 = dma.done.wait (%p1033_p8), %s190_s25, 256  }
  0x54   : > { %725 = vsyncadd (%p1033_p8), %s190_s25, 4294967040  ;;  %v602_v0 = vld [vmem:[%s184_s5] sm:$0xff]   ;;  %v603_v1 = vld [vmem:[%s184_s5 + $0x8] sm:$0xff]   ;;  %vm268_vm0 = vcmask 261120   ;;  %s491_s21 = sshll.u32 %s944_s4, 6  ;;  %vm346_vm1 = vcmask 523264  }
  0x55   : > { %240 = vxpose.xlu0.c.b16.start [1/2] (short) (narrow) %v602_v0, 64  ;;  %v604_v2 = vld [vmem:[%s193_s7] sm:$0xff]   ;;  %v605_v3 = vld [vmem:[%s193_s7 + $0x8] sm:$0xff]   ;;  %s218_s8 = scalar_lea.vmem [#allocation7], %s491_s21  ;;  %s507_s19 = sshll.u32 %s744_s12, 10 }
  0x56   : > { %514 = vmatprep.subr.bf16.mxu0 %v604_v2  ;;  %526 = vmatprep.subr.bf16.mxu1 %v604_v2  ;;  %s370_s18 = sshll.u32 %s218_s8, 4  ;;  %s969_s3 = scalar_lea.hbm %s1023_s2, %s507_s19  ;;  %s963_s18 = int_to_ptr.vmem [resolvable:$true] %s370_s18 }
  0x57   : > { %515 = vmatpush3.bf16.msra.mxu0 %v604_v2  ;;  %528 = vmatpush3.bf16.msra.mxu1 %v604_v2  ;;  %s356_s12 = scalar_lea.sflag [#allocation4], %s944_s4  ;;  %s666_s15 = scalar_lea.vmem %s963_s18, 1024 }
  0x58   : > { %516 = vmatprep.subr.bf16.mxu0 %v605_v3  ;;  %527 = vmatprep.subr.bf16.mxu1 %v605_v3  ;;  %p667_p0 = scmp.ne.s32.totalorder %s963_s18, %s666_s15  ;;  %p1034_p3 = scmp.ne.s32.totalorder %s1028_s22, 0 }
  0x59   : > { %241 = vxpose.xlu0.c.b16.end [2/2] (short) (narrow) %v603_v1, 64  ;;  %s758_s26 = smov [#allocation7]  }
  0x5a   : > { %p668_p12 = pnand %p667_p0, %p1034_p3  ;;  %s670_s16 = sshll.u32 %s758_s26, 4  ;;  %s671_s16 = int_to_ptr.vmem [resolvable:$false] %s670_s16 }
  0x5b   : > { %517 = vmatpush3.bf16.msra.mxu0 %v605_v3  ;;  %529 = vmatpush3.bf16.msra.mxu1 %v605_v3  ;;  %s672_s20 = scalar_lea.vmem %s671_s16, 2048  ;;  %p673_p7 = scmp.lt.s32.totalorder %s963_s18, %s671_s16 }
  0x5c   : > { %p669_p13 = pneg %p668_p12  ;;  %p674_p10 = scmp.lt.s32.totalorder %s672_s20, %s666_s15 }
  0x5e   : > { %p675_p9 = por %p674_p10, %p673_p7 }
  0x60   : > { %p676_p11 = pnand %p675_p9, %p669_p13 }
  0xbb   : > { %v248_v4 = vpop.trf.xlu0 }
  0xbc   : > { %518 = vmatprep.mubr.msk.bf16.mxu0 %vm268_vm0, %v248_v4 }
  0xbf   : > { %v249_v5 = vpop.trf.xlu0 }
  0xc0   : > { %519 = vmatmul.mubr.msk.bf16.vlgmr.msra.gmra.mrb[0].mxu0 %vm268_vm0, %v249_v5 }
  0xc3   : > { %v250_v6 = vpop.trf.xlu0 }
  0xc4   : > { %522 = vmatprep.mubr.msk.bf16.mxu1 %vm268_vm0, %v250_v6 }
  0xc7   : > { %v251_v7 = vpop.trf.xlu0 }
  0xc8   : > { %523 = vmatmul.mubr.msk.bf16.vlgmr.msra.gmra.mrb[0].mxu1 %vm268_vm0, %v251_v7 }
 0x193   : > { %v520_v8 = vpop.f32.mrb[0].mxu0 }
 0x194   : > { %349 = vst.msk [vmem:[%s218_s8 + $0x10] sm:$0xff] %vm346_vm1, %v520_v8  ;;  %v315_v9 = vpop.f32.mrb[1].mxu0 }
 0x195   : > { %347 = vst.msk [vmem:[%s218_s8] sm:$0xff] %vm346_vm1, %v315_v9  ;;  %v521_v10 = vpop.f32.mrb[2].mxu0 }
 0x196   : > { %350 = vst.msk [vmem:[%s218_s8 + $0x18] sm:$0xff] %vm346_vm1, %v521_v10  ;;  %v318_v11 = vpop.f32.mrb[3].mxu0 }
 0x197   : > { %348 = vst.msk [vmem:[%s218_s8 + $0x8] sm:$0xff] %vm346_vm1, %v318_v11 }
 0x19b   : > { %v524_v12 = vpop.f32.mrb[0].mxu1 }
 0x19c   : > { %353 = vst.msk [vmem:[%s218_s8 + $0x30] sm:$0xff] %vm346_vm1, %v524_v12  ;;  %v331_v13 = vpop.f32.mrb[1].mxu1 }
 0x19d   : > { %351 = vst.msk [vmem:[%s218_s8 + $0x20] sm:$0xff] %vm346_vm1, %v331_v13  ;;  %v525_v14 = vpop.f32.mrb[2].mxu1 }
 0x19e   : > { %354 = vst.msk [vmem:[%s218_s8 + $0x38] sm:$0xff] %vm346_vm1, %v525_v14  ;;  %v334_v15 = vpop.f32.mrb[3].mxu1 }
 0x19f   : > { %352 = vst.msk [vmem:[%s218_s8 + $0x28] sm:$0xff] %vm346_vm1, %v334_v15 }
 0x1a0   : > { %679 = shalt.err (!%p676_p11)
}
 0x1a1   : > { %s680_s27 = scalar_lea.hbm %s969_s3, 1024  ;;  %s684_s5 = scalar_lea.hbm %s1023_s2, 2048 }
 0x1a2   : > { %p681_p1 = scmp.ne.s32.totalorder %s969_s3, %s680_s27  ;;  %p685_p5 = scmp.lt.u32.totalorder %s969_s3, %s1023_s2 }
 0x1a3   : > { %p686_p4 = scmp.lt.u32.totalorder %s684_s5, %s680_s27  ;;  %p688_p0 = scmp.lt.u32.totalorder %s680_s27, %s969_s3 }
 0x1a4   : > { %p682_p6 = pnand %p681_p1, %p1034_p3 }
 0x1a5   : > { %p687_p8 = por %p686_p4, %p685_p5 }
 0x1a6   : > { %p683_p2 = pneg %p682_p6 }
 0x1a7   : > { %p689_p12 = por %p688_p0, %p687_p8 }
 0x1a9   : > { %p690_p13 = pnand %p689_p12, %p683_p2 }
 0x1ab   : > { %693 = shalt.err (!%p690_p13)
}
 0x1ac   : > { %s759_s21 = smov 128   ;;  %s760_s8 = smov 8  }
 0x1ad   : > { %534 = dma.vmem_to_hbm [thread:$0]  (%p1034_p3), %s963_s18, 1024, %s969_s3, %s356_s12, %s759_s21, %s759_s21, %s760_s8  }
 0x1ae PF: > { %s385_s19 = sand.u32 1, %s732_s9   ;;  %p1035_p7 = scmp.ne.s32.totalorder %s1029_s24, 0 }
 0x1af   : > { %p1036_p10 = scmp.ge.s32.totalorder %s752_s14, 2  ;;  %s386_s28 = scalar_lea.sflag [#allocation4], %s385_s19 }
 0x1b1   : > { %p544_p9 = pnand %p1036_p10, %p1035_p7 }
 0x1b3   : > { %727 = dma.done.wait (!%p544_p9), %s386_s28, 1024  }
 0x1b4   : > { %729 = vsyncadd (!%p544_p9), %s386_s28, 4294966272  ;;  %s21_s14 = sadd.s32 1, %s752_s14   ;;  %s1037_s9 = smov %s736_s10 }
 0x1b5   : > { %p18_p11 = scmp.ge.s32.totalorder %s21_s14, 4   ;;  %s1038_s10 = smov %s740_s11 }
 0x1b6   : > { %s1039_s11 = smov %s832_s23  ;;  %s1040_s12 = smov %s748_s13 }
 0x1b7   : > { %s1041_s13 = smov %s1043_s17  ;;  %20 = sbr.rel (!%p18_p11) target bundleno = 8 (0x8), region = 86 }
 0x1be   :  { %391 = vsyncpa [#allocation3], 1 }
 0x1bf   :  { %393 = vsyncpa [#allocation3 + $0x1], 1 }
 0x1c0   :  { %394 = vsyncpa [#allocation6], 1 }
 0x1c1   :  { %396 = vsyncpa [#allocation6 + $0x1], 1 }
 0x1c2   :  { %397 = vsyncpa [#allocation4], 1 }
 0x1c3   :  { %399 = vsyncpa [#allocation4 + $0x1], 1 }

</bundles_post_ra>
